<compile_context>
chip_gen: v7x
topology: tpu7x:2x2x1
jax: 0.10.0
libtpu: 0.0.40
codegen_flags: <defaults>
</compile_context>

<pallas_src>
import functools

import numpy as np
import jax
import jax.numpy as jnp
from jax import lax
from jax.experimental import pallas as pl
from jax.experimental.pallas import tpu as pltpu

_DEFAULT_ROW_TILE = 1024    # row tile for edge/node streaming (multiple of 8)
_UNROLL = 8                 # static unroll of per-edge gather/scatter loops
_N_PART = 4                 # partial scatter accumulators (break the vst->vld RMW chain)
_VMEM_LIMIT_CACHE = None


def _round_up(x, m):
    return ((x + m - 1) // m) * m


def _pick_tile(rows, target=_DEFAULT_ROW_TILE):
    # Largest tile <= target that satisfies the sublane (multiple-of-8) constraint.
    return min(target, _round_up(rows, 8))


def _vmem_limit_bytes():
    # Per-generation VMEM budget: ~75% of physical, capped.  ~48 MiB on v7x (64 MiB),
    # ~96-112 MiB on v5e/v6e (128 MiB).  Falls back to a safe default if the query fails.
    global _VMEM_LIMIT_CACHE
    if _VMEM_LIMIT_CACHE is None:
        try:
            cap = int(pltpu.get_tpu_info().vmem_capacity_bytes)
        except Exception:
            cap = 128 * 1024 * 1024
        _VMEM_LIMIT_CACHE = max(32 * 1024 * 1024, min(3 * cap // 4, 112 * 1024 * 1024))
    return _VMEM_LIMIT_CACHE


def _cparams(semantics):
    return pltpu.CompilerParams(dimension_semantics=semantics,
                                vmem_limit_bytes=_vmem_limit_bytes())


def _gelu(x):
    # tanh-form GELU: one EUP tanh + a few VALU ops instead of a ~12-op erf polynomial.
    # (review-sanctioned; tiny numeric difference vs torch's exact-erf GELU)
    c = 0.7978845608028654  # sqrt(2/pi)
    return 0.5 * x * (1.0 + jnp.tanh(c * (x + 0.044715 * (x * x * x))))


# ------------------------------------------------------------ in-kernel helpers


def _gather_pairs(idx_a_ref, idx_b_ref, base, tbl_ref, a_scr, b_scr, rows):
    # a_scr[t] = tbl[idx_a[base+t]] ; b_scr[t] = tbl[idx_b[base+t]]  (unrolled by 8)
    def body(j, carry):
        t0 = pl.multiple_of(j * _UNROLL, _UNROLL)
        for k in range(_UNROLL):
            t = t0 + k
            a_scr[pl.ds(t, 1), :] = tbl_ref[pl.ds(idx_a_ref[base + t], 1), :]
            b_scr[pl.ds(t, 1), :] = tbl_ref[pl.ds(idx_b_ref[base + t], 1), :]
        return carry
    lax.fori_loop(0, rows // _UNROLL, body, 0)


def _gather_rows(idx_ref, base, tbl_ref, out_ref, rows):
    # out[t] = tbl[idx[base+t]]  (unrolled by 8)
    def body(j, carry):
        t0 = pl.multiple_of(j * _UNROLL, _UNROLL)
        for k in range(_UNROLL):
            t = t0 + k
            out_ref[pl.ds(t, 1), :] = tbl_ref[pl.ds(idx_ref[base + t], 1), :]
        return carry
    lax.fori_loop(0, rows // _UNROLL, body, 0)


def _scatter_add_rows(idx_ref, base, val_ref, parts, rows):
    # parts[k % P][idx[base+t]] += val[t]  (round-robin over distinct scratch refs so the
    # vst->vld same-address dependency chain has distance P, and unrolled by 8).
    n_parts = len(parts)

    def body(j, carry):
        t0 = pl.multiple_of(j * _UNROLL, _UNROLL)
        for k in range(_UNROLL):
            t = t0 + k
            s = idx_ref[base + t]
            p = parts[k % n_parts]
            p[pl.ds(s, 1), :] = p[pl.ds(s, 1), :] + val_ref[pl.ds(t, 1), :]
        return carry
    lax.fori_loop(0, rows // _UNROLL, body, 0)


def _zero_parts(parts):
    for p in parts:
        p[...] = jnp.zeros_like(p)


def _sum_parts(parts):
    acc = parts[0][...]
    for p in parts[1:]:
        acc = acc + p[...]
    return acc


# ---------------------------------------------------------------- Pallas kernels


def _edge_mean_kernel(src_ref, dst_ref, x_ref, o_ref, xj_scr, xi_scr, *, te):
    # initial edge_attr = (x[src] + x[dst]) / 2
    e0 = pl.multiple_of(pl.program_id(0) * te, _UNROLL)
    _gather_pairs(src_ref, dst_ref, e0, x_ref, xj_scr, xi_scr, te)
    o_ref[...] = 0.5 * (xi_scr[...] + xj_scr[...])


def _processor_edge_kernel(src_ref, dst_ref, na_ref, ea_ref, w1m_ref, w1d_ref, w1e_ref,
                           b1_ref, w2_ref, b2_ref, invdeg_ref, agg_ref,
                           xj_scr, xi_scr, ue_scr, p0, p1, p2, p3, *, te):
    # Fused ProcessorLayer.message + edge_mlp + aggregate(scatter-mean by src).
    parts = (p0, p1, p2, p3)
    e0 = pl.multiple_of(pl.program_id(0) * te, _UNROLL)

    @pl.when(pl.program_id(0) == 0)
    def _():
        _zero_parts(parts)

    _gather_pairs(src_ref, dst_ref, e0, na_ref, xj_scr, xi_scr, te)

    xj = xj_scr[...]
    xi = xi_scr[...]
    mean = (0.5 * (xi + xj)).astype(jnp.bfloat16)
    hdiff = (0.5 * jnp.abs(xi - xj)).astype(jnp.bfloat16)

    # concat([mean, hdiff, edge_attr]) @ W1 via three pre-split weight blocks (no concat,
    # no in-kernel non-8-aligned slicing); bf16 MXU inputs, f32 accumulation.
    h = (jnp.dot(mean, w1m_ref[...], preferred_element_type=jnp.float32)
         + jnp.dot(hdiff, w1d_ref[...], preferred_element_type=jnp.float32)
         + jnp.dot(ea_ref[...].astype(jnp.bfloat16), w1e_ref[...],
                   preferred_element_type=jnp.float32)
         + b1_ref[...])
    h = _gelu(h)
    ue_scr[...] = _gelu(jnp.dot(h.astype(jnp.bfloat16), w2_ref[...],
                                preferred_element_type=jnp.float32) + b2_ref[...])

    _scatter_add_rows(src_ref, e0, ue_scr, parts, te)

    @pl.when(pl.program_id(0) == pl.num_programs(0) - 1)
    def _():
        agg_ref[...] = _sum_parts(parts) * invdeg_ref[...]   # mean (deg pre-inverted)


def _node_mlp_kernel(na_ref, agg_ref, w1n_ref, w1a_ref, b1_ref, w2_ref, b2_ref, o_ref):
    # Fused concat([node_attr, aggregated]) + node_mlp (pre-split W1 row blocks).
    h = _gelu(jnp.dot(na_ref[...].astype(jnp.bfloat16), w1n_ref[...],
                      preferred_element_type=jnp.float32)
              + jnp.dot(agg_ref[...].astype(jnp.bfloat16), w1a_ref[...],
                        preferred_element_type=jnp.float32)
              + b1_ref[...])
    o_ref[...] = _gelu(jnp.dot(h.astype(jnp.bfloat16), w2_ref[...],
                               preferred_element_type=jnp.float32) + b2_ref[...])


def _smoothing_kernel(src_ref, dst_ref, x_ref, invdeg_ref, edge_out_ref, node_out_ref,
                      xj_scr, xi_scr, p0, p1, p2, p3, *, te):
    # SmoothingLayer: edges = (x_i + x_j)/2, nodes = scatter-mean(edges, src)
    parts = (p0, p1, p2, p3)
    e0 = pl.multiple_of(pl.program_id(0) * te, _UNROLL)

    @pl.when(pl.program_id(0) == 0)
    def _():
        _zero_parts(parts)

    _gather_pairs(src_ref, dst_ref, e0, x_ref, xj_scr, xi_scr, te)
    xj_scr[...] = 0.5 * (xi_scr[...] + xj_scr[...])   # reuse xj_scr as the per-edge mean
    edge_out_ref[...] = xj_scr[...]
    _scatter_add_rows(src_ref, e0, xj_scr, parts, te)

    @pl.when(pl.program_id(0) == pl.num_programs(0) - 1)
    def _():
        node_out_ref[...] = _sum_parts(parts) * invdeg_ref[...]


def _pool_kernel(batch_ref, x_ref, invcnt_ref, pool_ref, p0, p1, p2, p3, *, tn):
    # global_mean_pool: scatter-add node rows into a resident [B+1, F] accumulator.
    parts = (p0, p1, p2, p3)
    n0 = pl.multiple_of(pl.program_id(0) * tn, _UNROLL)

    @pl.when(pl.program_id(0) == 0)
    def _():
        _zero_parts(parts)

    _scatter_add_rows(batch_ref, n0, x_ref, parts, tn)

    @pl.when(pl.program_id(0) == pl.num_programs(0) - 1)
    def _():
        pool_ref[...] = _sum_parts(parts) * invcnt_ref[...]


def _pool_broadcast_kernel(batch_ref, pool_ref, o_ref, *, tn):
    # pool[batch]: pure row gather (each node maps to exactly one graph).
    n0 = pl.multiple_of(pl.program_id(0) * tn, _UNROLL)
    _gather_rows(batch_ref, n0, pool_ref, o_ref, tn)


def _linear_kernel(x_ref, w_ref, b_ref, o_ref, *, apply_gelu):
    y = jnp.dot(x_ref[...].astype(jnp.bfloat16), w_ref[...],
                preferred_element_type=jnp.float32) + b_ref[...]
    if apply_gelu:
        y = _gelu(y)
    o_ref[...] = y


# ---------------------------------------------------------------- kernel wrappers


def edge_pair_mean(src, dst, x, edge_tile):
    e_pad = src.shape[0]
    n_pad, f = x.shape
    gs = pltpu.PrefetchScalarGridSpec(
        num_scalar_prefetch=2, grid=(e_pad // edge_tile,),
        in_specs=[pl.BlockSpec((n_pad, f), lambda e, s, d: (0, 0))],        # resident
        out_specs=pl.BlockSpec((edge_tile, f), lambda e, s, d: (e, 0)),     # streamed
        scratch_shapes=[pltpu.VMEM((edge_tile, f), jnp.float32),
                        pltpu.VMEM((edge_tile, f), jnp.float32)],
    )
    return pl.pallas_call(
        functools.partial(_edge_mean_kernel, te=edge_tile),
        grid_spec=gs,
        out_shape=jax.ShapeDtypeStruct((e_pad, f), jnp.float32),
        compiler_params=_cparams(("parallel",)),
    )(src, dst, x)


def processor_edge(src, dst, node_attr, edge_attr, w1, b1, w2, b2, inv_deg, edge_tile):
    e_pad = src.shape[0]
    n_pad, dn = node_attr.shape
    de = edge_attr.shape[1]
    h = w1.shape[1]
    ef = w2.shape[1]
    # Pre-split W1 into (mean | hdiff | edge_attr) row blocks in the wrapper (no in-kernel
    # non-8-aligned slices); pre-cast matmul weights to bf16 (biases stay f32).
    w1m = w1[:dn].astype(jnp.bfloat16)
    w1d = w1[dn:2 * dn].astype(jnp.bfloat16)
    w1e = w1[2 * dn:].astype(jnp.bfloat16)
    w2b = w2.astype(jnp.bfloat16)
    cost = pl.CostEstimate(
        flops=int(2 * e_pad * (2 * dn + de) * h + 2 * e_pad * h * ef),
        transcendentals=int(e_pad * (h + ef)),
        bytes_accessed=int(4 * (e_pad * de + n_pad * dn + n_pad * ef + n_pad)
                           + 2 * ((2 * dn + de) * h + h * ef)),
    )
    gs = pltpu.PrefetchScalarGridSpec(
        num_scalar_prefetch=2, grid=(e_pad // edge_tile,),
        in_specs=[
            pl.BlockSpec((n_pad, dn), lambda e, s, d: (0, 0)),          # node_attr (resident)
            pl.BlockSpec((edge_tile, de), lambda e, s, d: (e, 0)),      # edge_attr (streamed)
            pl.BlockSpec((dn, h), lambda e, s, d: (0, 0)),              # W1 mean block
            pl.BlockSpec((dn, h), lambda e, s, d: (0, 0)),              # W1 hdiff block
            pl.BlockSpec((de, h), lambda e, s, d: (0, 0)),              # W1 edge block
            pl.BlockSpec((1, h), lambda e, s, d: (0, 0)),
            pl.BlockSpec((h, ef), lambda e, s, d: (0, 0)),              # W2
            pl.BlockSpec((1, ef), lambda e, s, d: (0, 0)),
            pl.BlockSpec((n_pad, 1), lambda e, s, d: (0, 0)),           # 1/deg (resident)
        ],
        out_specs=pl.BlockSpec((n_pad, ef), lambda e, s, d: (0, 0)),    # resident accumulator
        scratch_shapes=[pltpu.VMEM((edge_tile, dn), jnp.float32),
                        pltpu.VMEM((edge_tile, dn), jnp.float32),
                        pltpu.VMEM((edge_tile, ef), jnp.float32)]
                       + [pltpu.VMEM((n_pad, ef), jnp.float32)] * _N_PART,
    )
    return pl.pallas_call(
        functools.partial(_processor_edge_kernel, te=edge_tile),
        grid_spec=gs,
        out_shape=jax.ShapeDtypeStruct((n_pad, ef), jnp.float32),
        compiler_params=_cparams(("arbitrary",)),        # sequential accumulation axis
        cost_estimate=cost,
    )(src, dst, node_attr, edge_attr, w1m, w1d, w1e, b1.reshape(1, -1), w2b,
      b2.reshape(1, -1), inv_deg)


def node_mlp(node_attr, agg, w1, b1, w2, b2, row_tile):
    m, dn = node_attr.shape
    ef = agg.shape[1]
    h = w1.shape[1]
    nf = w2.shape[1]
    w1n = w1[:dn].astype(jnp.bfloat16)       # pre-split (node_attr | agg) row blocks
    w1a = w1[dn:].astype(jnp.bfloat16)
    w2b = w2.astype(jnp.bfloat16)
    cost = pl.CostEstimate(
        flops=int(2 * m * (dn + ef) * h + 2 * m * h * nf),
        transcendentals=int(m * (h + nf)),
        bytes_accessed=int(4 * m * (dn + ef + nf) + 2 * ((dn + ef) * h + h * nf)),
    )
    gs = pltpu.PrefetchScalarGridSpec(
        num_scalar_prefetch=0, grid=(m // row_tile,),
        in_specs=[pl.BlockSpec((row_tile, dn), lambda i: (i, 0)),
                  pl.BlockSpec((row_tile, ef), lambda i: (i, 0)),
                  pl.BlockSpec((dn, h), lambda i: (0, 0)),
                  pl.BlockSpec((ef, h), lambda i: (0, 0)),
                  pl.BlockSpec((1, h), lambda i: (0, 0)),
                  pl.BlockSpec((h, nf), lambda i: (0, 0)),
                  pl.BlockSpec((1, nf), lambda i: (0, 0))],
        out_specs=pl.BlockSpec((row_tile, nf), lambda i: (i, 0)),
    )
    return pl.pallas_call(
        _node_mlp_kernel,
        grid_spec=gs,
        out_shape=jax.ShapeDtypeStruct((m, nf), jnp.float32),
        compiler_params=_cparams(("parallel",)),
        cost_estimate=cost,
    )(node_attr, agg, w1n, w1a, b1.reshape(1, -1), w2b, b2.reshape(1, -1))


def smoothing(src, dst, x, inv_deg, edge_tile):
    e_pad = src.shape[0]
    n_pad, f = x.shape
    gs = pltpu.PrefetchScalarGridSpec(
        num_scalar_prefetch=2, grid=(e_pad // edge_tile,),
        in_specs=[pl.BlockSpec((n_pad, f), lambda e, s, d: (0, 0)),
                  pl.BlockSpec((n_pad, 1), lambda e, s, d: (0, 0))],
        out_specs=(pl.BlockSpec((edge_tile, f), lambda e, s, d: (e, 0)),   # edge_attr out
                   pl.BlockSpec((n_pad, f), lambda e, s, d: (0, 0))),      # node accumulator
        scratch_shapes=[pltpu.VMEM((edge_tile, f), jnp.float32),
                        pltpu.VMEM((edge_tile, f), jnp.float32)]
                       + [pltpu.VMEM((n_pad, f), jnp.float32)] * _N_PART,
    )
    edge_out, node_out = pl.pallas_call(
        functools.partial(_smoothing_kernel, te=edge_tile),
        grid_spec=gs,
        out_shape=(jax.ShapeDtypeStruct((e_pad, f), jnp.float32),
                   jax.ShapeDtypeStruct((n_pad, f), jnp.float32)),
        compiler_params=_cparams(("arbitrary",)),
    )(src, dst, x, inv_deg)
    return edge_out, node_out


def global_pool(batch_p, x, inv_cnt, row_tile):
    n_pad, f = x.shape
    b1 = inv_cnt.shape[0]
    gs = pltpu.PrefetchScalarGridSpec(
        num_scalar_prefetch=1, grid=(n_pad // row_tile,),
        in_specs=[pl.BlockSpec((row_tile, f), lambda i, b: (i, 0)),
                  pl.BlockSpec((b1, 1), lambda i, b: (0, 0))],
        out_specs=pl.BlockSpec((b1, f), lambda i, b: (0, 0)),
        scratch_shapes=[pltpu.VMEM((b1, f), jnp.float32)] * _N_PART,
    )
    return pl.pallas_call(
        functools.partial(_pool_kernel, tn=row_tile),
        grid_spec=gs,
        out_shape=jax.ShapeDtypeStruct((b1, f), jnp.float32),
        compiler_params=_cparams(("arbitrary",)),
    )(batch_p, x, inv_cnt)


def pool_broadcast(batch_p, pool, n_pad, row_tile):
    b1, f = pool.shape
    gs = pltpu.PrefetchScalarGridSpec(
        num_scalar_prefetch=1, grid=(n_pad // row_tile,),
        in_specs=[pl.BlockSpec((b1, f), lambda i, b: (0, 0))],
        out_specs=pl.BlockSpec((row_tile, f), lambda i, b: (i, 0)),
    )
    return pl.pallas_call(
        functools.partial(_pool_broadcast_kernel, tn=row_tile),
        grid_spec=gs,
        out_shape=jax.ShapeDtypeStruct((n_pad, f), jnp.float32),
        compiler_params=_cparams(("parallel",)),
    )(batch_p, pool)


def pallas_linear(x, w, b, row_tile, *, apply_gelu):
    m, din = x.shape
    dout = w.shape[1]
    wb = w.astype(jnp.bfloat16)
    gs = pltpu.PrefetchScalarGridSpec(
        num_scalar_prefetch=0, grid=(m // row_tile,),
        in_specs=[pl.BlockSpec((row_tile, din), lambda i: (i, 0)),
                  pl.BlockSpec((din, dout), lambda i: (0, 0)),
                  pl.BlockSpec((1, dout), lambda i: (0, 0))],
        out_specs=pl.BlockSpec((row_tile, dout), lambda i: (i, 0)),
    )
    return pl.pallas_call(
        functools.partial(_linear_kernel, apply_gelu=apply_gelu),
        grid_spec=gs,
        out_shape=jax.ShapeDtypeStruct((m, dout), jnp.float32),
        compiler_params=_cparams(("parallel",)),
    )(x, wb, b.reshape(1, -1))


# ------------------------------------------------------------- parameters (synthetic)


class ParamBank:
    """Deterministic stand-in for nn.LazyLinear init (uniform +-1/sqrt(fan_in))."""

    def __init__(self, seed=0):
        self._key = jax.random.PRNGKey(seed)
        self._n = 0

    def linear(self, din, dout):
        kw = jax.random.fold_in(self._key, 2 * self._n)
        kb = jax.random.fold_in(self._key, 2 * self._n + 1)
        self._n += 1
        bound = float(1.0 / np.sqrt(din))
        w = jax.random.uniform(kw, (din, dout), jnp.float32, -bound, bound)
        b = jax.random.uniform(kb, (dout,), jnp.float32, -bound, bound)
        return w, b


# ------------------------------------------------------------------ FlowGNN model


class FlowGNNPallas:
    def __init__(self, input_dim, output_dim, edge_filters, node_filters,
                 fc_in_dim, fc_out_dim, fc_con_list=None, fc_hidden_layers=(128, 128),
                 hidden_size=128, seed=0):
        self.geom_in_dim = input_dim
        self.out_dim = output_dim
        self.edge_filters = edge_filters
        self.node_filters = node_filters
        self.fc_in_dim = fc_in_dim          # stored but unused (LazyLinear), as in torch
        self.fc_out_dim = fc_out_dim
        self.fc_con_list = list(fc_con_list) if fc_con_list is not None else []
        self.fc_hidden_layers = fc_hidden_layers
        self.hidden_size = hidden_size
        self.bank = ParamBank(seed)
        self._params = {}

    def _lazy_linear(self, name, din, dout):
        if name not in self._params:
            self._params[name] = self.bank.linear(din, dout)
        return self._params[name]

    def _fc_block(self, x, fc_idx, row_tile):
        h = x
        for li, hd in enumerate(self.fc_hidden_layers):
            w, b = self._lazy_linear(f"fc{fc_idx}_l{li}", h.shape[1], hd)
            h = pallas_linear(h, w, b, row_tile, apply_gelu=True)
        w, b = self._lazy_linear(f"fc{fc_idx}_out", h.shape[1], self.fc_out_dim)
        return pallas_linear(h, w, b, row_tile, apply_gelu=True)

    def __call__(self, nodes, edge_index, batch, num_graphs):
        n, f0 = nodes.shape
        e = edge_index.shape[1]

        node_tile = _pick_tile(n + 1)
        n_pad = _round_up(n + 1, node_tile)            # >= n+1 -> a padded "dummy" node exists
        edge_tile = _pick_tile(e)
        e_pad = _round_up(e, edge_tile)

        # Pad rows; padded edges point at padded node `n`, padded nodes -> dummy graph.
        x = jnp.zeros((n_pad, f0), jnp.float32).at[:n].set(nodes.astype(jnp.float32))
        src = jnp.full((e_pad,), n, jnp.int32).at[:e].set(edge_index[0].astype(jnp.int32))
        dst = jnp.full((e_pad,), n, jnp.int32).at[:e].set(edge_index[1].astype(jnp.int32))
        batch_p = jnp.full((n_pad,), num_graphs, jnp.int32).at[:n].set(batch.astype(jnp.int32))

        # One-time index preprocessing (fixed for the whole forward pass): source degree
        # and nodes-per-graph, pre-inverted with the max(.,1) clamp (torch_scatter mean).
        deg = jnp.zeros((n_pad, 1), jnp.float32).at[src, 0].add(1.0)
        inv_deg = 1.0 / jnp.maximum(deg, 1.0)
        cnt = jnp.zeros((num_graphs + 1, 1), jnp.float32).at[batch_p, 0].add(1.0)
        inv_cnt = 1.0 / jnp.maximum(cnt, 1.0)

        # edge_attr = mean(x[edge_index.T], 1) == (x[src] + x[dst]) / 2
        edge_attr = edge_pair_mean(src, dst, x, edge_tile)
        skip_info = x[:, : self.geom_in_dim]
        fc_out = None
        fc_count = 0

        for i, (ef, nf) in enumerate(zip(self.edge_filters, self.node_filters)):
            if i in self.fc_con_list:
                pool = global_pool(batch_p, x, inv_cnt, node_tile)             # [B+1, Fx]
                graph_pool = pool_broadcast(batch_p, pool, n_pad, node_tile)   # [Np, Fx]
                fc_in = graph_pool if fc_out is None else jnp.concatenate([fc_out, graph_pool], axis=1)
                fc_out = self._fc_block(fc_in, fc_count, node_tile)
                fc_count += 1

            # ----- FlowGNN_conv_block -----
            node_attr = jnp.concatenate([x, skip_info], axis=1)
            if i in self.fc_con_list and fc_out is not None:
                node_attr = jnp.concatenate([node_attr, fc_out], axis=1)
            dn = node_attr.shape[1]

            # ProcessorLayer (message + edge MLP + scatter-mean fused)
            de = edge_attr.shape[1]
            ew1, eb1 = self._lazy_linear(f"p{i}_edge_l0", 2 * dn + de, self.hidden_size)
            ew2, eb2 = self._lazy_linear(f"p{i}_edge_l1", self.hidden_size, ef)
            agg = processor_edge(src, dst, node_attr, edge_attr,
                                 ew1, eb1, ew2, eb2, inv_deg, edge_tile)       # [Np, ef]

            nw1, nb1 = self._lazy_linear(f"p{i}_node_l0", dn + ef, self.hidden_size)
            nw2, nb2 = self._lazy_linear(f"p{i}_node_l1", self.hidden_size, nf)
            x = node_mlp(node_attr, agg, nw1, nb1, nw2, nb2, node_tile)        # [Np, nf]

            # SmoothingLayer (gather + mean + scatter-mean fused)
            edge_attr, x = smoothing(src, dst, x, inv_deg, edge_tile)

        dw, db = self._lazy_linear("decoder", x.shape[1], self.out_dim)
        pred = pallas_linear(x, dw, db, node_tile, apply_gelu=False)
        return pred[:n]


# --------------------------------------------------------------------------- main

if __name__ == "__main__":
    key = jax.random.PRNGKey(0)
    N, B = 32, 2
    input_dim = 3
    nodes = jax.random.normal(key, (N, input_dim), dtype=jnp.float32)
    npg = N // B
    batch = jnp.repeat(jnp.arange(B, dtype=jnp.int32), npg)                   # [N]

    # Bidirectional ring within each graph -> every node appears in edge_index[0],
    # matching the size assumption of scatter(..., edge_index[0]) in the torch code.
    src_list, dst_list = [], []
    for g in range(B):
        off = g * npg
        for k in range(npg):
            a = off + k
            b = off + (k + 1) % npg
            src_list += [a, b]
            dst_list += [b, a]
    edge_index = jnp.array([src_list, dst_list], dtype=jnp.int32)             # [2, 64]

    model = FlowGNNPallas(
        input_dim=input_dim, output_dim=2,
        edge_filters=(8, 8), node_filters=(8, 8),
        fc_in_dim=8, fc_out_dim=4, fc_con_list=[1],
        fc_hidden_layers=(16, 16), hidden_size=128, seed=0)

    pred = model(nodes, edge_index, batch, num_graphs=B)
    jax.block_until_ready(pred)
    assert pred.shape == (N, 2) and pred.dtype == jnp.float32
    print("KERNEL_OK")
</pallas_src>

<mosaic_0001>
module attributes {stable_mosaic.version = 11 : i64} {
  func.func @_edge_mean_kernel(%arg0: i32, %arg1: memref<64xi32, #tpu.memory_space<smem>>, %arg2: memref<64xi32, #tpu.memory_space<smem>>, %arg3: memref<40x3xf32, #tpu.memory_space<vmem>>, %arg4: memref<64x3xf32, #tpu.memory_space<vmem>>, %arg5: memref<64x3xf32, #tpu.memory_space<vmem>>, %arg6: memref<64x3xf32, #tpu.memory_space<vmem>>) attributes {dimension_semantics = [#tpu.dimension_semantics<parallel>], iteration_bounds = array<i64: 1>, scalar_prefetch = 2 : i64, scratch_operands = 2 : i64, tpu.core_type = #tpu.core_type<tc>, window_params = [{pipeline_mode = #tpu.pipeline_mode<synchronous>, transform_indices = @transform_0, window_bounds = array<i64: 40, 3>}, {transform_indices = @transform_1, window_bounds = array<i64: 64, 3>}]} {
    %c64_i32 = arith.constant 64 : i32
    %0 = arith.muli %arg0, %c64_i32 : i32
    %1 = tpu.assume_multiple %0, 8 : i32
    %c0_i32 = arith.constant 0 : i32
    %c8_i32 = arith.constant 8 : i32
    %2 = arith.addi %c0_i32, %c8_i32 : i32
    %c1_i32 = arith.constant 1 : i32
    scf.for %arg7 = %c0_i32 to %2 step %c1_i32  : i32 {
      %c8_i32_6 = arith.constant 8 : i32
      %9 = arith.muli %arg7, %c8_i32_6 : i32
      %10 = tpu.assume_multiple %9, 8 : i32
      %c0_i32_7 = arith.constant 0 : i32
      %11 = arith.addi %10, %c0_i32_7 : i32
      %12 = arith.addi %1, %11 : i32
      %13 = arith.index_cast %12 : i32 to index
      %14 = memref.load %arg1[%13] : memref<64xi32, #tpu.memory_space<smem>>
      %15 = arith.index_cast %14 : i32 to index
      %c0_8 = arith.constant 0 : index
      %16 = vector.load %arg3[%15, %c0_8] : memref<40x3xf32, #tpu.memory_space<vmem>>, vector<1x3xf32>
      %17 = arith.index_cast %11 : i32 to index
      %c0_9 = arith.constant 0 : index
      %18 = vector.load %arg5[%17, %c0_9] : memref<64x3xf32, #tpu.memory_space<vmem>>, vector<1x3xf32>
      tpu.vector_store %arg5[%17, %c0_9], %16 {strides = array<i32>} : memref<64x3xf32, #tpu.memory_space<vmem>>, vector<1x3xf32>,
      %19 = arith.addi %1, %11 : i32
      %20 = arith.index_cast %19 : i32 to index
      %21 = memref.load %arg2[%20] : memref<64xi32, #tpu.memory_space<smem>>
      %22 = arith.index_cast %21 : i32 to index
      %c0_10 = arith.constant 0 : index
      %23 = vector.load %arg3[%22, %c0_10] : memref<40x3xf32, #tpu.memory_space<vmem>>, vector<1x3xf32>
      %24 = arith.index_cast %11 : i32 to index
      %c0_11 = arith.constant 0 : index
      %25 = vector.load %arg6[%24, %c0_11] : memref<64x3xf32, #tpu.memory_space<vmem>>, vector<1x3xf32>
      tpu.vector_store %arg6[%24, %c0_11], %23 {strides = array<i32>} : memref<64x3xf32, #tpu.memory_space<vmem>>, vector<1x3xf32>,
      %c1_i32_12 = arith.constant 1 : i32
      %26 = arith.addi %10, %c1_i32_12 : i32
      %27 = arith.addi %1, %26 : i32
      %28 = arith.index_cast %27 : i32 to index
      %29 = memref.load %arg1[%28] : memref<64xi32, #tpu.memory_space<smem>>
      %30 = arith.index_cast %29 : i32 to index
      %c0_13 = arith.constant 0 : index
      %31 = vector.load %arg3[%30, %c0_13] : memref<40x3xf32, #tpu.memory_space<vmem>>, vector<1x3xf32>
      %32 = arith.index_cast %26 : i32 to index
      %c0_14 = arith.constant 0 : index
      %33 = vector.load %arg5[%32, %c0_14] : memref<64x3xf32, #tpu.memory_space<vmem>>, vector<1x3xf32>
      tpu.vector_store %arg5[%32, %c0_14], %31 {strides = array<i32>} : memref<64x3xf32, #tpu.memory_space<vmem>>, vector<1x3xf32>,
      %34 = arith.addi %1, %26 : i32
      %35 = arith.index_cast %34 : i32 to index
      %36 = memref.load %arg2[%35] : memref<64xi32, #tpu.memory_space<smem>>
      %37 = arith.index_cast %36 : i32 to index
      %c0_15 = arith.constant 0 : index
      %38 = vector.load %arg3[%37, %c0_15] : memref<40x3xf32, #tpu.memory_space<vmem>>, vector<1x3xf32>
      %39 = arith.index_cast %26 : i32 to index
      %c0_16 = arith.constant 0 : index
      %40 = vector.load %arg6[%39, %c0_16] : memref<64x3xf32, #tpu.memory_space<vmem>>, vector<1x3xf32>
      tpu.vector_store %arg6[%39, %c0_16], %38 {strides = array<i32>} : memref<64x3xf32, #tpu.memory_space<vmem>>, vector<1x3xf32>,
      %c2_i32 = arith.constant 2 : i32
      %41 = arith.addi %10, %c2_i32 : i32
      %42 = arith.addi %1, %41 : i32
      %43 = arith.index_cast %42 : i32 to index
      %44 = memref.load %arg1[%43] : memref<64xi32, #tpu.memory_space<smem>>
      %45 = arith.index_cast %44 : i32 to index
      %c0_17 = arith.constant 0 : index
      %46 = vector.load %arg3[%45, %c0_17] : memref<40x3xf32, #tpu.memory_space<vmem>>, vector<1x3xf32>
      %47 = arith.index_cast %41 : i32 to index
      %c0_18 = arith.constant 0 : index
      %48 = vector.load %arg5[%47, %c0_18] : memref<64x3xf32, #tpu.memory_space<vmem>>, vector<1x3xf32>
      tpu.vector_store %arg5[%47, %c0_18], %46 {strides = array<i32>} : memref<64x3xf32, #tpu.memory_space<vmem>>, vector<1x3xf32>,
      %49 = arith.addi %1, %41 : i32
      %50 = arith.index_cast %49 : i32 to index
      %51 = memref.load %arg2[%50] : memref<64xi32, #tpu.memory_space<smem>>
      %52 = arith.index_cast %51 : i32 to index
      %c0_19 = arith.constant 0 : index
      %53 = vector.load %arg3[%52, %c0_19] : memref<40x3xf32, #tpu.memory_space<vmem>>, vector<1x3xf32>
      %54 = arith.index_cast %41 : i32 to index
      %c0_20 = arith.constant 0 : index
      %55 = vector.load %arg6[%54, %c0_20] : memref<64x3xf32, #tpu.memory_space<vmem>>, vector<1x3xf32>
      tpu.vector_store %arg6[%54, %c0_20], %53 {strides = array<i32>} : memref<64x3xf32, #tpu.memory_space<vmem>>, vector<1x3xf32>,
      %c3_i32 = arith.constant 3 : i32
      %56 = arith.addi %10, %c3_i32 : i32
      %57 = arith.addi %1, %56 : i32
      %58 = arith.index_cast %57 : i32 to index
      %59 = memref.load %arg1[%58] : memref<64xi32, #tpu.memory_space<smem>>
      %60 = arith.index_cast %59 : i32 to index
      %c0_21 = arith.constant 0 : index
      %61 = vector.load %arg3[%60, %c0_21] : memref<40x3xf32, #tpu.memory_space<vmem>>, vector<1x3xf32>
      %62 = arith.index_cast %56 : i32 to index
      %c0_22 = arith.constant 0 : index
      %63 = vector.load %arg5[%62, %c0_22] : memref<64x3xf32, #tpu.memory_space<vmem>>, vector<1x3xf32>
      tpu.vector_store %arg5[%62, %c0_22], %61 {strides = array<i32>} : memref<64x3xf32, #tpu.memory_space<vmem>>, vector<1x3xf32>,
      %64 = arith.addi %1, %56 : i32
      %65 = arith.index_cast %64 : i32 to index
      %66 = memref.load %arg2[%65] : memref<64xi32, #tpu.memory_space<smem>>
      %67 = arith.index_cast %66 : i32 to index
      %c0_23 = arith.constant 0 : index
      %68 = vector.load %arg3[%67, %c0_23] : memref<40x3xf32, #tpu.memory_space<vmem>>, vector<1x3xf32>
      %69 = arith.index_cast %56 : i32 to index
      %c0_24 = arith.constant 0 : index
      %70 = vector.load %arg6[%69, %c0_24] : memref<64x3xf32, #tpu.memory_space<vmem>>, vector<1x3xf32>
      tpu.vector_store %arg6[%69, %c0_24], %68 {strides = array<i32>} : memref<64x3xf32, #tpu.memory_space<vmem>>, vector<1x3xf32>,
      %c4_i32 = arith.constant 4 : i32
      %71 = arith.addi %10, %c4_i32 : i32
      %72 = arith.addi %1, %71 : i32
      %73 = arith.index_cast %72 : i32 to index
      %74 = memref.load %arg1[%73] : memref<64xi32, #tpu.memory_space<smem>>
      %75 = arith.index_cast %74 : i32 to index
      %c0_25 = arith.constant 0 : index
      %76 = vector.load %arg3[%75, %c0_25] : memref<40x3xf32, #tpu.memory_space<vmem>>, vector<1x3xf32>
      %77 = arith.index_cast %71 : i32 to index
      %c0_26 = arith.constant 0 : index
      %78 = vector.load %arg5[%77, %c0_26] : memref<64x3xf32, #tpu.memory_space<vmem>>, vector<1x3xf32>
      tpu.vector_store %arg5[%77, %c0_26], %76 {strides = array<i32>} : memref<64x3xf32, #tpu.memory_space<vmem>>, vector<1x3xf32>,
      %79 = arith.addi %1, %71 : i32
      %80 = arith.index_cast %79 : i32 to index
      %81 = memref.load %arg2[%80] : memref<64xi32, #tpu.memory_space<smem>>
      %82 = arith.index_cast %81 : i32 to index
      %c0_27 = arith.constant 0 : index
      %83 = vector.load %arg3[%82, %c0_27] : memref<40x3xf32, #tpu.memory_space<vmem>>, vector<1x3xf32>
      %84 = arith.index_cast %71 : i32 to index
      %c0_28 = arith.constant 0 : index
      %85 = vector.load %arg6[%84, %c0_28] : memref<64x3xf32, #tpu.memory_space<vmem>>, vector<1x3xf32>
      tpu.vector_store %arg6[%84, %c0_28], %83 {strides = array<i32>} : memref<64x3xf32, #tpu.memory_space<vmem>>, vector<1x3xf32>,
      %c5_i32 = arith.constant 5 : i32
      %86 = arith.addi %10, %c5_i32 : i32
      %87 = arith.addi %1, %86 : i32
      %88 = arith.index_cast %87 : i32 to index
      %89 = memref.load %arg1[%88] : memref<64xi32, #tpu.memory_space<smem>>
      %90 = arith.index_cast %89 : i32 to index
      %c0_29 = arith.constant 0 : index
      %91 = vector.load %arg3[%90, %c0_29] : memref<40x3xf32, #tpu.memory_space<vmem>>, vector<1x3xf32>
      %92 = arith.index_cast %86 : i32 to index
      %c0_30 = arith.constant 0 : index
      %93 = vector.load %arg5[%92, %c0_30] : memref<64x3xf32, #tpu.memory_space<vmem>>, vector<1x3xf32>
      tpu.vector_store %arg5[%92, %c0_30], %91 {strides = array<i32>} : memref<64x3xf32, #tpu.memory_space<vmem>>, vector<1x3xf32>,
      %94 = arith.addi %1, %86 : i32
      %95 = arith.index_cast %94 : i32 to index
      %96 = memref.load %arg2[%95] : memref<64xi32, #tpu.memory_space<smem>>
      %97 = arith.index_cast %96 : i32 to index
      %c0_31 = arith.constant 0 : index
      %98 = vector.load %arg3[%97, %c0_31] : memref<40x3xf32, #tpu.memory_space<vmem>>, vector<1x3xf32>
      %99 = arith.index_cast %86 : i32 to index
      %c0_32 = arith.constant 0 : index
      %100 = vector.load %arg6[%99, %c0_32] : memref<64x3xf32, #tpu.memory_space<vmem>>, vector<1x3xf32>
      tpu.vector_store %arg6[%99, %c0_32], %98 {strides = array<i32>} : memref<64x3xf32, #tpu.memory_space<vmem>>, vector<1x3xf32>,
      %c6_i32 = arith.constant 6 : i32
      %101 = arith.addi %10, %c6_i32 : i32
      %102 = arith.addi %1, %101 : i32
      %103 = arith.index_cast %102 : i32 to index
      %104 = memref.load %arg1[%103] : memref<64xi32, #tpu.memory_space<smem>>
      %105 = arith.index_cast %104 : i32 to index
      %c0_33 = arith.constant 0 : index
      %106 = vector.load %arg3[%105, %c0_33] : memref<40x3xf32, #tpu.memory_space<vmem>>, vector<1x3xf32>
      %107 = arith.index_cast %101 : i32 to index
      %c0_34 = arith.constant 0 : index
      %108 = vector.load %arg5[%107, %c0_34] : memref<64x3xf32, #tpu.memory_space<vmem>>, vector<1x3xf32>
      tpu.vector_store %arg5[%107, %c0_34], %106 {strides = array<i32>} : memref<64x3xf32, #tpu.memory_space<vmem>>, vector<1x3xf32>,
      %109 = arith.addi %1, %101 : i32
      %110 = arith.index_cast %109 : i32 to index
      %111 = memref.load %arg2[%110] : memref<64xi32, #tpu.memory_space<smem>>
      %112 = arith.index_cast %111 : i32 to index
      %c0_35 = arith.constant 0 : index
      %113 = vector.load %arg3[%112, %c0_35] : memref<40x3xf32, #tpu.memory_space<vmem>>, vector<1x3xf32>
      %114 = arith.index_cast %101 : i32 to index
      %c0_36 = arith.constant 0 : index
      %115 = vector.load %arg6[%114, %c0_36] : memref<64x3xf32, #tpu.memory_space<vmem>>, vector<1x3xf32>
      tpu.vector_store %arg6[%114, %c0_36], %113 {strides = array<i32>} : memref<64x3xf32, #tpu.memory_space<vmem>>, vector<1x3xf32>,
      %c7_i32 = arith.constant 7 : i32
      %116 = arith.addi %10, %c7_i32 : i32
      %117 = arith.addi %1, %116 : i32
      %118 = arith.index_cast %117 : i32 to index
      %119 = memref.load %arg1[%118] : memref<64xi32, #tpu.memory_space<smem>>
      %120 = arith.index_cast %119 : i32 to index
      %c0_37 = arith.constant 0 : index
      %121 = vector.load %arg3[%120, %c0_37] : memref<40x3xf32, #tpu.memory_space<vmem>>, vector<1x3xf32>
      %122 = arith.index_cast %116 : i32 to index
      %c0_38 = arith.constant 0 : index
      %123 = vector.load %arg5[%122, %c0_38] : memref<64x3xf32, #tpu.memory_space<vmem>>, vector<1x3xf32>
      tpu.vector_store %arg5[%122, %c0_38], %121 {strides = array<i32>} : memref<64x3xf32, #tpu.memory_space<vmem>>, vector<1x3xf32>,
      %124 = arith.addi %1, %116 : i32
      %125 = arith.index_cast %124 : i32 to index
      %126 = memref.load %arg2[%125] : memref<64xi32, #tpu.memory_space<smem>>
      %127 = arith.index_cast %126 : i32 to index
      %c0_39 = arith.constant 0 : index
      %128 = vector.load %arg3[%127, %c0_39] : memref<40x3xf32, #tpu.memory_space<vmem>>, vector<1x3xf32>
      %129 = arith.index_cast %116 : i32 to index
      %c0_40 = arith.constant 0 : index
      %130 = vector.load %arg6[%129, %c0_40] : memref<64x3xf32, #tpu.memory_space<vmem>>, vector<1x3xf32>
      tpu.vector_store %arg6[%129, %c0_40], %128 {strides = array<i32>} : memref<64x3xf32, #tpu.memory_space<vmem>>, vector<1x3xf32>,
    }
    %c8_i32_0 = arith.constant 8 : i32
    %c0 = arith.constant 0 : index
    %c0_1 = arith.constant 0 : index
    %3 = vector.load %arg6[%c0, %c0_1] : memref<64x3xf32, #tpu.memory_space<vmem>>, vector<64x3xf32>
    %c0_2 = arith.constant 0 : index
    %c0_3 = arith.constant 0 : index
    %4 = vector.load %arg5[%c0_2, %c0_3] : memref<64x3xf32, #tpu.memory_space<vmem>>, vector<64x3xf32>
    %5 = arith.addf %3, %4 : vector<64x3xf32>
    %cst = arith.constant 5.000000e-01 : f32
    %6 = vector.broadcast %cst : f32 to vector<64x3xf32>
    %7 = arith.mulf %6, %5 : vector<64x3xf32>
    %c0_4 = arith.constant 0 : index
    %c0_5 = arith.constant 0 : index
    %8 = vector.load %arg4[%c0_4, %c0_5] : memref<64x3xf32, #tpu.memory_space<vmem>>, vector<64x3xf32>
    tpu.vector_store %arg4[%c0_4, %c0_5], %7 {strides = array<i32>} : memref<64x3xf32, #tpu.memory_space<vmem>>, vector<64x3xf32>,
    return
  }
  func.func @transform_0(%arg0: i32, %arg1: memref<64xi32, #tpu.memory_space<smem>>, %arg2: memref<64xi32, #tpu.memory_space<smem>>) -> (i32, i32) {
    %c0_i32 = arith.constant 0 : i32
    %c0_i32_0 = arith.constant 0 : i32
    %c0_i32_1 = arith.constant 0 : i32
    return %c0_i32, %c0_i32_0 : i32, i32
  }
  func.func @transform_1(%arg0: i32, %arg1: memref<64xi32, #tpu.memory_space<smem>>, %arg2: memref<64xi32, #tpu.memory_space<smem>>) -> (i32, i32) {
    %c0_i32 = arith.constant 0 : i32
    %c0_i32_0 = arith.constant 0 : i32
    return %arg0, %c0_i32 : i32, i32
  }
}

</mosaic_0001>

<bundles_post_ra>
// kernel: tpu_custom_call.1
= control target key start
LH: loop header
LB: loop body
LE: loop exit
PB: predicated region body
PF: predicated region fallthrough
CT: control target
= control target key end

     0   :  { %s530_s0 = inlined_call_operand.hbm [shape: s32[64], index: 0, kind: input, shape index: {}]   ;;  %s531_s2 = inlined_call_operand.hbm [shape: f32[40,3], index: 2, kind: input, shape index: {}]   ;;  %s532_s3 = inlined_call_operand.hbm [shape: f32[64,3], index: 3, kind: output, shape index: {}]   ;;  %s533_s1 = inlined_call_operand.hbm [shape: s32[64], index: 1, kind: input, shape index: {}]  }
   0x1   :  { %s303_s14 = scalar_lea.hbm %s530_s0, 16 }
   0x2   :  { %p304_p0 = scmp.ne.s32.totalorder %s530_s0, %s303_s14  ;;  %p307_p1 = scmp.lt.u32.totalorder %s303_s14, %s530_s0 }
   0x4   :  { %p309_p2 = pnand %p307_p1, %p304_p0 }
   0x6   :  { %312 = shalt.err (!%p309_p2)  }
   0x7   :  { %s381_s19 = smov [#allocation5]   ;;  %s313_s24 = scalar_lea.hbm %s533_s1, 16 }
   0x8   :  { %9 = dma.hbm_to_smem %s530_s0, 16, %s381_s19, [#allocation4] }
   0x9   :  { %p314_p3 = scmp.ne.s32.totalorder %s533_s1, %s313_s24  ;;  %p317_p4 = scmp.lt.u32.totalorder %s313_s24, %s533_s1 }
   0xb   :  { %p319_p5 = pnand %p317_p4, %p314_p3 }
   0xd   :  { %322 = shalt.err (!%p319_p5)  }
   0xe   :  { %s382_s29 = smov [#allocation6]  }
   0xf   :  { %11 = dma.hbm_to_smem %s533_s1, 16, %s382_s29, [#allocation4] }
  0x10   :  { %371 = dma.done.wait [#allocation4], 32 }
  0x11   :  { %372 = vsyncadd [#allocation4], 4294967264 }
  0x12   :  { %13 = sfence }
  0x13   :  { %14 = vsyncpa [#allocation8], 0 }
  0x14   :  { %15 = vsyncpa [#allocation9], 0  ;;  %s383_s0 = smov [#allocation7]   ;;  %s323_s8 = scalar_lea.hbm %s531_s2, 640 }
  0x15   :  { %s21_s5 = sshll.u32 %s383_s0, 4  ;;  %p324_p6 = scmp.ne.s32.totalorder %s531_s2, %s323_s8  ;;  %s22_s5 = int_to_ptr.vmem [resolvable:$true] %s21_s5 }
  0x16   :  { %p327_p7 = scmp.lt.u32.totalorder %s323_s8, %s531_s2 }
  0x18   :  { %p329_p8 = pnand %p327_p7, %p324_p6 }
  0x1a   :  { %332 = shalt.err (!%p329_p8)
}
  0x1b   :  { %s333_s1 = scalar_lea.vmem %s22_s5, 640  ;;  %p338_p10 = scmp.lt.s32.totalorder %s22_s5, %s22_s5 }
  0x1c   :  { %p334_p9 = scmp.ne.s32.totalorder %s22_s5, %s333_s1  ;;  %p339_p11 = scmp.lt.s32.totalorder %s333_s1, %s333_s1 }
  0x1e   :  { %p340_p12 = por %p339_p11, %p338_p10 }
  0x20   :  { %p341_p13 = pnand %p340_p12, %p334_p9 }
  0x22   :  { %344 = shalt.err (!%p341_p13)
}
  0x23   :  { %s384_s13 = smov 128   ;;  %s385_s14 = smov 8  }
  0x24   :  { %27 = dma.hbm_to_vmem [thread:$0]  %s531_s2, 640, %s22_s5, [#allocation8], %s384_s13, %s384_s13, %s385_s14  }
  0x25   :  { %373 = dma.done.wait [#allocation8], 640  }
  0x26   :  { %374 = vsyncadd [#allocation8], 4294966656  ;;  %s446_s17 = smov 0  }
  0x27 LB: > { %s452_s18 = sshll.u32 %s379_s17, 3  ;;  %vm44_vm0 = vcmask 16384   ;;  %s37_s17 = sadd.s32 1, %s379_s17   ;;  %s379_s17 = sphi %s446_s17, %s37_s17  }
  0x28   : > { %s40_s2 = sld [smem:[#allocation5 + %s452_s18]]  ;;  %s51_s20 = sadd.s32 1, %s452_s18 }
  0x29   : > { %s46_s19 = sld [smem:[#allocation6 + %s452_s18]]  ;;  %s63_s21 = sadd.s32 2, %s452_s18 }
  0x2a   : > { %s53_s22 = sld [smem:[#allocation5 + %s51_s20]]  ;;  %s75_s26 = sadd.s32 3, %s452_s18 }
  0x2b   : > { %s58_s23 = sld [smem:[#allocation6 + %s51_s20]]  ;;  %s87_s27 = sadd.s32 4, %s452_s18 }
  0x2c   : > { %s65_s24 = sld [smem:[#allocation5 + %s63_s21]]  ;;  %s463_s4 = scalar_lea.vmem [#allocation2], %s452_s18 }
  0x2d   : > { %s70_s25 = sld [smem:[#allocation6 + %s63_s21]]  ;;  %s468_s7 = scalar_lea.vmem [#allocation3], %s452_s18 }
  0x2e   : > { %s77_s28 = sld [smem:[#allocation5 + %s75_s26]]  ;;  %s41_s29 = scalar_lea.vmem [#allocation7], %s40_s2 }
  0x2f   : > { %v42_v0 = vld [vmem:[%s41_s29] sm:$0x1]  ;;  %s460_s30 = sld [smem:[#allocation6 + %s75_s26]]  ;;  %s47_s0 = scalar_lea.vmem [#allocation7], %s46_s19 }
  0x30   : > { %45 = vst.msk [vmem:[%s463_s4] sm:$0x1] %vm44_vm0, %v42_v0  ;;  %v48_v1 = vld [vmem:[%s47_s0] sm:$0x1]  ;;  %s89_s5 = sld [smem:[#allocation5 + %s87_s27]]  ;;  %s54_s8 = scalar_lea.vmem [#allocation7], %s53_s22 }
  0x31   : > { %s94_s6 = sld [smem:[#allocation6 + %s87_s27]]  ;;  %50 = vst.msk [vmem:[%s468_s7] sm:$0x1] %vm44_vm0, %v48_v1  ;;  %v55_v2 = vld [vmem:[%s54_s8] sm:$0x1]  ;;  %s59_s9 = scalar_lea.vmem [#allocation7], %s58_s23 }
  0x32   : > { %v60_v3 = vld [vmem:[%s59_s9] sm:$0x1]  ;;  %262 = vst.msk [vmem:[%s463_s4 + $0x1] sm:$0x1] %vm44_vm0, %v55_v2  ;;  %s66_s10 = scalar_lea.vmem [#allocation7], %s65_s24  ;;  %s99_s12 = sadd.s32 5, %s452_s18 }
  0x33   : > { %264 = vst.msk [vmem:[%s468_s7 + $0x1] sm:$0x1] %vm44_vm0, %v60_v3  ;;  %v67_v4 = vld [vmem:[%s66_s10] sm:$0x1]  ;;  %s71_s11 = scalar_lea.vmem [#allocation7], %s70_s25  ;;  %s111_s1 = sadd.s32 6, %s452_s18 }
  0x34   : > { %v72_v5 = vld [vmem:[%s71_s11] sm:$0x1]  ;;  %266 = vst.msk [vmem:[%s463_s4 + $0x2] sm:$0x1] %vm44_vm0, %v67_v4  ;;  %s101_s15 = sld [smem:[#allocation5 + %s99_s12]]  ;;  %s78_s16 = scalar_lea.vmem [#allocation7], %s77_s28 }
  0x35   : > { %268 = vst.msk [vmem:[%s468_s7 + $0x2] sm:$0x1] %vm44_vm0, %v72_v5  ;;  %v79_v6 = vld [vmem:[%s78_s16] sm:$0x1]  ;;  %s106_s2 = sld [smem:[#allocation6 + %s99_s12]]  ;;  %s83_s19 = scalar_lea.vmem [#allocation7], %s460_s30 }
  0x36   : > { %270 = vst.msk [vmem:[%s463_s4 + $0x3] sm:$0x1] %vm44_vm0, %v79_v6  ;;  %v84_v7 = vld [vmem:[%s83_s19] sm:$0x1]  ;;  %s90_s20 = scalar_lea.vmem [#allocation7], %s89_s5  ;;  %s113_s22 = sld [smem:[#allocation5 + %s111_s1]] }
  0x37   : > { %272 = vst.msk [vmem:[%s468_s7 + $0x3] sm:$0x1] %vm44_vm0, %v84_v7  ;;  %v91_v8 = vld [vmem:[%s90_s20] sm:$0x1]  ;;  %s95_s21 = scalar_lea.vmem [#allocation7], %s94_s6  ;;  %s118_s23 = sld [smem:[#allocation6 + %s111_s1]] }
  0x38   : > { %v96_v9 = vld [vmem:[%s95_s21] sm:$0x1]  ;;  %274 = vst.msk [vmem:[%s463_s4 + $0x4] sm:$0x1] %vm44_vm0, %v91_v8  ;;  %s123_s24 = sadd.s32 7, %s452_s18  ;;  %p34_p0 = scmp.ge.s32.totalorder %s37_s17, 8  }
  0x39   : > { %276 = vst.msk [vmem:[%s468_s7 + $0x4] sm:$0x1] %vm44_vm0, %v96_v9  ;;  %s125_s25 = sld [smem:[#allocation5 + %s123_s24]]  ;;  %vm167_vm1 = vcmask (%p34_p0), 23552   ;;  %s386_s17 = smov (%p34_p0), [#allocation10]  }
  0x3a   : > { %s130_s26 = sld [smem:[#allocation6 + %s123_s24]]  ;;  %s102_s27 = scalar_lea.vmem [#allocation7], %s101_s15 }
  0x3b   : > { %v103_v10 = vld [vmem:[%s102_s27] sm:$0x1]  ;;  %s107_s28 = scalar_lea.vmem [#allocation7], %s106_s2 }
  0x3c   : > { %278 = vst.msk [vmem:[%s463_s4 + $0x5] sm:$0x1] %vm44_vm0, %v103_v10  ;;  %v108_v11 = vld [vmem:[%s107_s28] sm:$0x1]  ;;  %s114_s29 = scalar_lea.vmem [#allocation7], %s113_s22  ;;  %36 = sbr.rel (!%p34_p0) target bundleno = 39 (0x27), region = 67 }
  0x3d   : > { %280 = vst.msk [vmem:[%s468_s7 + $0x5] sm:$0x1] %vm44_vm0, %v108_v11  ;;  %v115_v12 = vld [vmem:[%s114_s29] sm:$0x1]  ;;  %s119_s30 = scalar_lea.vmem [#allocation7], %s118_s23 }
  0x3e   : > { %v120_v13 = vld [vmem:[%s119_s30] sm:$0x1]  ;;  %282 = vst.msk [vmem:[%s463_s4 + $0x6] sm:$0x1] %vm44_vm0, %v115_v12 }
  0x3f   : > { %284 = vst.msk [vmem:[%s468_s7 + $0x6] sm:$0x1] %vm44_vm0, %v120_v13  ;;  %s126_s18 = scalar_lea.vmem [#allocation7], %s125_s25 }
  0x40   : > { %v127_v14 = vld [vmem:[%s126_s18] sm:$0x1]  ;;  %s131_s0 = scalar_lea.vmem [#allocation7], %s130_s26 }
  0x41   : > { %v132_v15 = vld [vmem:[%s131_s0] sm:$0x1]  ;;  %286 = vst.msk [vmem:[%s463_s4 + $0x7] sm:$0x1] %vm44_vm0, %v127_v14  ;;  %s181_s4 = sshll.u32 (%p34_p0), %s386_s17, 4  ;;  %s182_s4 = int_to_ptr.vmem [resolvable:$true] %s181_s4 }
  0x42   : > { %288 = vst.msk [vmem:[%s468_s7 + $0x7] sm:$0x1] %vm44_vm0, %v132_v15  ;;  %s345_s5 = scalar_lea.vmem (%p34_p0), %s182_s4, 1024  ;;  %p350_p2 = scmp.lt.s32.totalorder (%p34_p0), %s182_s4, %s182_s4 }
  0x43   :  { %p346_p1 = scmp.ne.s32.totalorder %s182_s4, %s345_s5  ;;  %p351_p3 = scmp.lt.s32.totalorder %s345_s5, %s345_s5 }
  0x45   :  { %p352_p4 = por %p351_p3, %p350_p2 }
  0x47   :  { %p353_p5 = pnand %p352_p4, %p346_p1 }
  0x48   :  { %v143_v17 = vld [vmem:[#allocation2] sm:$0xff]  ;;  %v144_v20 = vld [vmem:[#allocation2 + $0x8] sm:$0xff]  ;;  %v145_v22 = vld [vmem:[#allocation2 + $0x10] sm:$0xff] }
  0x49   :  { %v135_v16 = vld [vmem:[#allocation3] sm:$0xff]  ;;  %v136_v18 = vld [vmem:[#allocation3 + $0x8] sm:$0xff]  ;;  %v137_v21 = vld [vmem:[#allocation3 + $0x10] sm:$0xff] }
  0x4a   :  { %v151_v19 = vadd.f32 %v143_v17, %v135_v16  ;;  %v152_v23 = vadd.f32 %v144_v20, %v136_v18  ;;  %v153_v24 = vadd.f32 %v145_v22, %v137_v21  ;;  %v138_v25 = vld [vmem:[#allocation3 + $0x18] sm:$0xff]  ;;  %v139_v27 = vld [vmem:[#allocation3 + $0x20] sm:$0xff]  ;;  %v140_v31 = vld [vmem:[#allocation3 + $0x28] sm:$0xff] }
  0x4b   :  { %v146_v26 = vld [vmem:[#allocation2 + $0x18] sm:$0xff]  ;;  %v147_v30 = vld [vmem:[#allocation2 + $0x20] sm:$0xff]  ;;  %v148_v32 = vld [vmem:[#allocation2 + $0x28] sm:$0xff] }
  0x4c   :  { %v159_v28 = vmul.f32 0.5, %v151_v19  ;;  %v154_v29 = vadd.f32 %v146_v26, %v138_v25  ;;  %v160_v33 = vmul.f32 0.5, %v152_v23  ;;  %v161_v34 = vmul.f32 0.5, %v153_v24  ;;  %v141_v37 = vld [vmem:[#allocation3 + $0x30] sm:$0xff]  ;;  %v142_v39 = vld [vmem:[#allocation3 + $0x38] sm:$0xff] }
  0x4d   :  { %v155_v35 = vadd.f32 %v147_v30, %v139_v27  ;;  %v156_v36 = vadd.f32 %v148_v32, %v140_v31  ;;  %v149_v38 = vld [vmem:[#allocation2 + $0x30] sm:$0xff]  ;;  %v150_v42 = vld [vmem:[#allocation2 + $0x38] sm:$0xff] }
  0x4e   :  { %168 = vst.msk [vmem:[#allocation10] sm:$0xff] %vm167_vm1, %v159_v28  ;;  %v162_v40 = vmul.f32 0.5, %v154_v29  ;;  %v157_v41 = vadd.f32 %v149_v38, %v141_v37  ;;  %169 = vst.msk [vmem:[#allocation10 + $0x8] sm:$0xff] %vm167_vm1, %v160_v33  ;;  %v158_v45 = vadd.f32 %v150_v42, %v142_v39 }
  0x4f   :  { %170 = vst.msk [vmem:[#allocation10 + $0x10] sm:$0xff] %vm167_vm1, %v161_v34  ;;  %v163_v43 = vmul.f32 0.5, %v155_v35  ;;  %v164_v44 = vmul.f32 0.5, %v156_v36 }
  0x50   :  { %171 = vst.msk [vmem:[#allocation10 + $0x18] sm:$0xff] %vm167_vm1, %v162_v40  ;;  %v165_v46 = vmul.f32 0.5, %v157_v41  ;;  %v166_v47 = vmul.f32 0.5, %v158_v45 }
  0x51   :  { %172 = vst.msk [vmem:[#allocation10 + $0x20] sm:$0xff] %vm167_vm1, %v163_v43  ;;  %173 = vst.msk [vmem:[#allocation10 + $0x28] sm:$0xff] %vm167_vm1, %v164_v44 }
  0x52   :  { %174 = vst.msk [vmem:[#allocation10 + $0x30] sm:$0xff] %vm167_vm1, %v165_v46  ;;  %175 = vst.msk [vmem:[#allocation10 + $0x38] sm:$0xff] %vm167_vm1, %v166_v47 }
  0x53   :  { %356 = shalt.err (!%p353_p5)
}
  0x54   :  { %s357_s8 = scalar_lea.hbm %s532_s3, 1024 }
  0x55   :  { %p358_p6 = scmp.ne.s32.totalorder %s532_s3, %s357_s8  ;;  %p361_p7 = scmp.lt.u32.totalorder %s357_s8, %s532_s3 }
  0x57   :  { %p363_p8 = pnand %p361_p7, %p358_p6 }
  0x59   :  { %366 = shalt.err (!%p363_p8)
}
  0x5a   :  { %187 = dma.vmem_to_hbm [thread:$0]  %s182_s4, 1024, %s532_s3, [#allocation9], %s384_s13, %s384_s13, %s385_s14  }
  0x5b   :  { %375 = dma.done.wait [#allocation9], 1024  }
  0x5c   :  { %376 = vsyncadd [#allocation9], 4294966272 }
  0x5d   :  { %191 = vsyncpa [#allocation8], 1 }
  0x5e   :  { %192 = vsyncpa [#allocation9], 1 }

</bundles_post_ra>
